<compile_context>
chip_gen: v5e
topology: v5e:2x2
jax: 0.10.0
libtpu: 0.0.40
codegen_flags: <defaults>
</compile_context>

<pallas_src>
import functools

import jax
import jax.numpy as jnp
import numpy as np
from jax import lax
from jax.experimental import pallas as pl
from jax.experimental.pallas import tpu as pltpu

K = 5       # conv kernel size
PAD = 2     # conv padding
LANE = 128
VMEM_LIMIT = 48 * 1024 * 1024


def _round_up(n, m):
    return ((n + m - 1) // m) * m


# --------------------------------------------------------------------------
# Fused [Conv1d(k=5,pad=2) + folded BatchNorm + ReLU] x 3
# One grid step per batch row; all three layers stay in VMEM.
# All five taps are packed into a single bf16 MXU matmul per layer.
# --------------------------------------------------------------------------
def _conv3_kernel(xp_ref, w0_ref, b0_ref, w1_ref, b1_ref, w2_ref, b2_ref, o_ref):
    # xp_ref: (1, T+2*PAD, C0p) f32     w*: (K*Cin_p, Cout_p) bf16   b*: (1, Cout_p) f32
    # o_ref : (T, Cpp) bf16
    T = o_ref.shape[0]

    def clayer(src, w_ref, b_ref):
        # src: (T+2*PAD, Cin_p) f32 value  ->  (T, Cout_p) f32 after bias + ReLU.
        # Pack the 5 shifted taps along the contraction dim -> one bf16 matmul (K >= 256).
        packed = jnp.concatenate([src[k:k + T, :] for k in range(K)],
                                 axis=1).astype(jnp.bfloat16)
        acc = jnp.dot(packed, w_ref[...], preferred_element_type=jnp.float32)
        return jnp.maximum(acc + b_ref[...], 0.0)

    def pad_t(h):
        z = jnp.zeros((PAD, h.shape[1]), h.dtype)
        return jnp.concatenate([z, h, z], axis=0)

    h0 = clayer(xp_ref[0], w0_ref, b0_ref)
    h1 = clayer(pad_t(h0), w1_ref, b1_ref)
    h2 = clayer(pad_t(h1), w2_ref, b2_ref)
    o_ref[...] = h2.astype(jnp.bfloat16)


def conv3_bn_relu(x_btc, w_list, b_list):
    """x_btc: (B, T, C0) f32.  Returns ((T, B*Cpp) bf16 time-major slab, Cpp)."""
    B, T, C0 = x_btc.shape
    Cpre = w_list[0].shape[2]
    C0p = _round_up(C0, LANE)
    Cpp = _round_up(Cpre, LANE)

    # Pad time (conv halo) and channels (lane density) once in HBM; pack taps into rows.
    xp = jnp.pad(x_btc, ((0, 0), (PAD, PAD), (0, C0p - C0)))

    def prep_w(w, cin_p):
        cin = w.shape[1]
        wp = jnp.pad(w, ((0, 0), (0, cin_p - cin), (0, Cpp - Cpre)))   # (K, cin_p, Cpp)
        return wp.reshape(K * cin_p, Cpp).astype(jnp.bfloat16)

    w0 = prep_w(w_list[0], C0p)
    w1 = prep_w(w_list[1], Cpp)
    w2 = prep_w(w_list[2], Cpp)
    b0 = jnp.pad(b_list[0], (0, Cpp - Cpre)).reshape(1, Cpp)
    b1 = jnp.pad(b_list[1], (0, Cpp - Cpre)).reshape(1, Cpp)
    b2 = jnp.pad(b_list[2], (0, Cpp - Cpre)).reshape(1, Cpp)

    out = pl.pallas_call(
        _conv3_kernel,
        out_shape=jax.ShapeDtypeStruct((T, B * Cpp), jnp.bfloat16),
        grid=(B,),
        in_specs=[
            pl.BlockSpec((1, T + 2 * PAD, C0p), lambda b: (b, 0, 0)),
            pl.BlockSpec((K * C0p, Cpp), lambda b: (0, 0)),
            pl.BlockSpec((1, Cpp), lambda b: (0, 0)),
            pl.BlockSpec((K * Cpp, Cpp), lambda b: (0, 0)),
            pl.BlockSpec((1, Cpp), lambda b: (0, 0)),
            pl.BlockSpec((K * Cpp, Cpp), lambda b: (0, 0)),
            pl.BlockSpec((1, Cpp), lambda b: (0, 0)),
        ],
        out_specs=pl.BlockSpec((T, Cpp), lambda b: (0, b)),
        compiler_params=pltpu.CompilerParams(
            dimension_semantics=("parallel",),
            vmem_limit_bytes=VMEM_LIMIT),
    )(xp, w0, b0, w1, b1, w2, b2)
    return out, Cpp


# --------------------------------------------------------------------------
# One bidirectional LSTM layer: serial recurrence only (projections hoisted to XLA).
# State layout: (2B, 2H) block-diagonal, gate columns interleaved [i_f i_b f_f f_b g_f g_b o_f o_b].
# --------------------------------------------------------------------------
def _bilstm_layer_kernel(xwf_ref, xwb_ref, whh_ref, o_ref, hf_st, hb_st, *, batch):
    # xwf_ref: (T, 2B, 8H) f32  -- fwd gate inputs at time t in rows 0:B (bwd lanes = 0), rest 0
    # xwb_ref: (T, 2B, 8H) f32  -- bwd gate inputs at time t in rows B:2B (fwd lanes = 0), rest 0
    # whh_ref: (2H, 8H) f32     -- [Whh_f ; Whh_b] with interleaved, block-zeroed columns
    # o_ref  : (T, B, 2H) f32   -- [fwd | bwd] per (t, b)
    # hf_st/hb_st: (T, 2B, 2H) f32 scratch (time-indexed per-step h)
    B = batch
    T = xwf_ref.shape[0]
    H2 = whh_ref.shape[0]                      # = 2H
    whh = whh_ref[...]                         # keep Whh resident in vregs

    def one_step(s, carry):
        h, c = carry
        sb = T - 1 - s
        # Single aligned leading-dim reads + one matmul; no concats / masks on the chain.
        g = xwf_ref[s] + xwb_ref[sb] + jnp.dot(h, whh, preferred_element_type=jnp.float32)
        i_g = jax.nn.sigmoid(g[:, 0:H2])
        f_g = jax.nn.sigmoid(g[:, H2:2 * H2])
        g_g = jnp.tanh(g[:, 2 * H2:3 * H2])
        o_g = jax.nn.sigmoid(g[:, 3 * H2:4 * H2])
        c = f_g * c + i_g * g_g                # off-diagonal blocks stay exactly zero
        h = o_g * jnp.tanh(c)
        hf_st[s] = h                           # full-width stores, time-indexed
        hb_st[sb] = h
        return (h, c)

    def two_steps(s2, carry):                  # manual unroll-by-2
        return one_step(2 * s2 + 1, one_step(2 * s2, carry))

    init = (jnp.zeros((2 * B, H2), jnp.float32),
            jnp.zeros((2 * B, H2), jnp.float32))
    carry = lax.fori_loop(0, T // 2, two_steps, init)
    if T % 2:                                  # static epilogue for odd T
        one_step(T - 1, carry)

    # Bulk combine: fwd half comes from rows 0:B, bwd half from rows B:2B; because the
    # off-diagonal lane blocks are exactly zero, a single add yields [h_f(t) | h_b(t)].
    hf = hf_st[...]
    hb = hb_st[...]
    o_ref[...] = hf[:, 0:B, :] + hb[:, B:2 * B, :]


def bilstm_layer(xwf, xwb, whh, batch):
    T = xwf.shape[0]
    H2 = whh.shape[0]
    vmem = pl.BlockSpec(memory_space=pltpu.MemorySpace.VMEM)
    return pl.pallas_call(
        functools.partial(_bilstm_layer_kernel, batch=batch),
        out_shape=jax.ShapeDtypeStruct((T, batch, H2), jnp.float32),
        in_specs=[vmem, vmem, vmem],
        out_specs=vmem,
        scratch_shapes=[pltpu.VMEM((T, 2 * batch, H2), jnp.float32),
                        pltpu.VMEM((T, 2 * batch, H2), jnp.float32)],
        compiler_params=pltpu.CompilerParams(vmem_limit_bytes=VMEM_LIMIT),
    )(xwf, xwb, whh)


# --------------------------------------------------------------------------
# Weight / gate-input preparation (wrapper-side, cheap XLA ops)
# --------------------------------------------------------------------------
def _interleave_gates(w, H, slot):
    """(..., 4H) -> (..., 8H); gate block g lands at columns [2g*H + slot*H : 2g*H + (slot+1)*H]."""
    z = jnp.zeros(w.shape[:-1] + (H,), w.dtype)
    parts = []
    for g in range(4):
        blk = w[..., g * H:(g + 1) * H]
        parts.extend([blk, z] if slot == 0 else [z, blk])
    return jnp.concatenate(parts, axis=-1)


def _prep_lstm_layer(p, prefix, in_dim_pad, H):
    def pad_rows(w):
        return jnp.pad(w, ((0, in_dim_pad - w.shape[0]), (0, 0)))
    wf = pad_rows(_interleave_gates(p['wih' + prefix + 'f'], H, 0)).astype(jnp.bfloat16)
    wb = pad_rows(_interleave_gates(p['wih' + prefix + 'b'], H, 1)).astype(jnp.bfloat16)
    bf = _interleave_gates(p['b' + prefix + 'f'], H, 0)
    bb = _interleave_gates(p['b' + prefix + 'b'], H, 1)
    whh = jnp.concatenate([_interleave_gates(p['whh' + prefix + 'f'], H, 0),
                           _interleave_gates(p['whh' + prefix + 'b'], H, 1)], axis=0)
    return wf, wb, bf, bb, whh


def _gate_inputs(x_flat_bf16, wih_i, bias_i, T, B, fwd):
    """Hoisted input projection -> (T, 2B, 8H) with exact zero padding rows/lanes."""
    proj = jnp.dot(x_flat_bf16, wih_i, preferred_element_type=jnp.float32) + bias_i
    proj = proj.reshape(T, B, proj.shape[-1])
    pad = ((0, 0), (0, B), (0, 0)) if fwd else ((0, 0), (B, 0), (0, 0))
    return jnp.pad(proj, pad)


# --------------------------------------------------------------------------
# Parameter init (deterministic, matches PyTorch __init__ shapes)
# --------------------------------------------------------------------------
def init_params(key, dim_neck, dim_emb, dim_pre):
    keys = jax.random.split(key, 40)
    ki = iter(keys)
    eps = 1e-5
    convs = []
    for i in range(3):
        cin = 84 + dim_emb if i == 0 else dim_pre
        cout = dim_pre
        gain = float(np.sqrt(2.0))                       # calculate_gain('relu')
        bound = gain * np.sqrt(6.0 / (cin * K + cout * K))
        W = jax.random.uniform(next(ki), (cout, cin, K), jnp.float32, -bound, bound)
        bb = 1.0 / np.sqrt(cin * K)
        b = jax.random.uniform(next(ki), (cout,), jnp.float32, -bb, bb)
        # BatchNorm1d default params, eval mode -> fold into conv
        gamma = jnp.ones((cout,), jnp.float32)
        beta = jnp.zeros((cout,), jnp.float32)
        mean = jnp.zeros((cout,), jnp.float32)
        var = jnp.ones((cout,), jnp.float32)
        scale = gamma / jnp.sqrt(var + eps)
        w_f = W * scale[:, None, None]
        b_f = scale * (b - mean) + beta
        convs.append({'w': jnp.transpose(w_f, (2, 1, 0)),   # (K, Cin, Cout)
                      'b': b_f})

    H = dim_neck
    bound = 1.0 / np.sqrt(H)

    def u(k, shape):
        return jax.random.uniform(k, shape, jnp.float32, -bound, bound)

    lstm = {}
    for layer, in_dim in (('0', dim_pre), ('1', 2 * H)):
        for d in ('f', 'b'):
            wih = u(next(ki), (4 * H, in_dim))
            whh = u(next(ki), (4 * H, H))
            bih = u(next(ki), (4 * H,))
            bhh = u(next(ki), (4 * H,))
            lstm['wih' + layer + d] = wih.T              # (in_dim, 4H), cols [i|f|g|o]
            lstm['whh' + layer + d] = whh.T              # (H, 4H)
            lstm['b' + layer + d] = bih + bhh            # (4H,)
    return {'convs': convs, 'lstm': lstm}


# --------------------------------------------------------------------------
# Forward pass (Pallas path)
# --------------------------------------------------------------------------
def encoder_forward(x, c_org, params, dim_neck, freq):
    # x: (B, 1, T, 84)  c_org: (B, dim_emb)   (mirrors x.squeeze(1).transpose(2,1) + cat)
    x = jnp.squeeze(x, 1)                                # (B, T, 84)
    B, T, _ = x.shape
    dim_emb = c_org.shape[1]
    assert T % freq == 0, "codes extraction requires T to be a multiple of freq"
    h = jnp.concatenate(
        [x, jnp.broadcast_to(c_org[:, None, :], (B, T, dim_emb))], axis=-1)

    conv_out, Cpp = conv3_bn_relu(
        h, [l['w'] for l in params['convs']], [l['b'] for l in params['convs']])
    x_flat = conv_out.reshape(T * B, Cpp)                # bf16, time-major, free reshape

    H = dim_neck
    p = params['lstm']

    # ---- layer 0 ----
    w0f, w0b, b0f, b0b, whh0 = _prep_lstm_layer(p, '0', Cpp, H)
    xwf0 = _gate_inputs(x_flat, w0f, b0f, T, B, fwd=True)
    xwb0 = _gate_inputs(x_flat, w0b, b0b, T, B, fwd=False)
    h0 = bilstm_layer(xwf0, xwb0, whh0, B)               # (T, B, 2H) f32, [fwd | bwd]

    # ---- layer 1 ----
    w1f, w1b, b1f, b1b, whh1 = _prep_lstm_layer(p, '1', 2 * H, H)
    h0_flat = h0.reshape(T * B, 2 * H).astype(jnp.bfloat16)
    xwf1 = _gate_inputs(h0_flat, w1f, b1f, T, B, fwd=True)
    xwb1 = _gate_inputs(h0_flat, w1b, b1b, T, B, fwd=False)
    outputs = bilstm_layer(xwf1, xwb1, whh1, B)          # (T, B, 2H)

    codes = []
    for i in range(0, T, freq):
        codes.append(jnp.concatenate([outputs[i + freq - 1, :, :H],
                                      outputs[i, :, H:]], axis=-1))
    return codes


# --------------------------------------------------------------------------
# Pure-JAX reference (same math / same bf16 casts, no Pallas) for validation
# --------------------------------------------------------------------------
def ref_forward(x, c_org, params, dim_neck, freq):
    x = jnp.squeeze(x, 1)
    B, T, _ = x.shape
    dim_emb = c_org.shape[1]
    h = jnp.concatenate(
        [x, jnp.broadcast_to(c_org[:, None, :], (B, T, dim_emb))], axis=-1)
    for layer in params['convs']:
        xp = jnp.pad(h, ((0, 0), (PAD, PAD), (0, 0))).astype(jnp.bfloat16)
        w = layer['w'].astype(jnp.bfloat16)
        acc = sum(jnp.einsum('btc,cd->btd', xp[:, k:k + T, :], w[k],
                             preferred_element_type=jnp.float32) for k in range(K))
        h = jnp.maximum(acc + layer['b'], 0.0)
    h = h.astype(jnp.bfloat16)                           # conv output stored bf16 in Pallas path
    p = params['lstm']
    H = dim_neck

    def run_dir(inp_bf16, wih, whh, b, reverse):
        xw = jnp.einsum('btc,cg->btg', inp_bf16, wih.astype(jnp.bfloat16),
                        preferred_element_type=jnp.float32) + b
        hh = jnp.zeros((B, H), jnp.float32)
        cc = jnp.zeros((B, H), jnp.float32)
        outs = [None] * T
        ts = range(T - 1, -1, -1) if reverse else range(T)
        for t in ts:
            g = xw[:, t] + hh @ whh
            i = jax.nn.sigmoid(g[:, :H])
            f = jax.nn.sigmoid(g[:, H:2 * H])
            gg = jnp.tanh(g[:, 2 * H:3 * H])
            o = jax.nn.sigmoid(g[:, 3 * H:])
            cc = f * cc + i * gg
            hh = o * jnp.tanh(cc)
            outs[t] = hh
        return jnp.stack(outs, axis=1)

    f0 = run_dir(h, p['wih0f'], p['whh0f'], p['b0f'], False)
    b0 = run_dir(h, p['wih0b'], p['whh0b'], p['b0b'], True)
    l0 = jnp.concatenate([f0, b0], axis=-1).astype(jnp.bfloat16)
    f1 = run_dir(l0, p['wih1f'], p['whh1f'], p['b1f'], False)
    b1 = run_dir(l0, p['wih1b'], p['whh1b'], p['b1b'], True)
    out = jnp.concatenate([f1, b1], axis=-1)
    return [jnp.concatenate([out[:, i + freq - 1, :H], out[:, i, H:]], axis=-1)
            for i in range(0, T, freq)]


if __name__ == "__main__":
    dim_neck, dim_emb, dim_pre, freq = 8, 16, 32, 4
    B, T = 2, 8
    key = jax.random.PRNGKey(0)
    k_x, k_c, k_p = jax.random.split(key, 3)
    x = jax.random.normal(k_x, (B, 1, T, 84), jnp.float32)
    c_org = jax.random.normal(k_c, (B, dim_emb), jnp.float32)
    params = init_params(k_p, dim_neck, dim_emb, dim_pre)

    codes = encoder_forward(x, c_org, params, dim_neck, freq)
    codes = [jax.block_until_ready(c) for c in codes]

    ref = ref_forward(x, c_org, params, dim_neck, freq)
    for a, b in zip(codes, ref):
        np.testing.assert_allclose(np.asarray(a), np.asarray(b), rtol=2e-2, atol=2e-2)
    print("KERNEL_OK")
</pallas_src>

<mosaic_0001>
module attributes {stable_mosaic.version = 11 : i64} {
  func.func @_conv3_kernel(%arg0: i32, %arg1: memref<1x12x128xf32, #tpu.memory_space<vmem>>, %arg2: memref<640x128xbf16, #tpu.memory_space<vmem>>, %arg3: memref<1x128xf32, #tpu.memory_space<vmem>>, %arg4: memref<640x128xbf16, #tpu.memory_space<vmem>>, %arg5: memref<1x128xf32, #tpu.memory_space<vmem>>, %arg6: memref<640x128xbf16, #tpu.memory_space<vmem>>, %arg7: memref<1x128xf32, #tpu.memory_space<vmem>>, %arg8: memref<8x128xbf16, #tpu.memory_space<vmem>>) attributes {dimension_semantics = [#tpu.dimension_semantics<parallel>], iteration_bounds = array<i64: 2>, scalar_prefetch = 0 : i64, scratch_operands = 0 : i64, tpu.core_type = #tpu.core_type<tc>, window_params = [{transform_indices = @transform_0, window_bounds = array<i64: 1, 12, 128>}, {pipeline_mode = #tpu.pipeline_mode<synchronous>, transform_indices = @transform_1, window_bounds = array<i64: 640, 128>}, {pipeline_mode = #tpu.pipeline_mode<synchronous>, transform_indices = @transform_2, window_bounds = array<i64: 1, 128>}, {pipeline_mode = #tpu.pipeline_mode<synchronous>, transform_indices = @transform_3, window_bounds = array<i64: 640, 128>}, {pipeline_mode = #tpu.pipeline_mode<synchronous>, transform_indices = @transform_4, window_bounds = array<i64: 1, 128>}, {pipeline_mode = #tpu.pipeline_mode<synchronous>, transform_indices = @transform_5, window_bounds = array<i64: 640, 128>}, {pipeline_mode = #tpu.pipeline_mode<synchronous>, transform_indices = @transform_6, window_bounds = array<i64: 1, 128>}, {transform_indices = @transform_7, window_bounds = array<i64: 8, 128>}]} {
    %c0 = arith.constant 0 : index
    %c0_0 = arith.constant 0 : index
    %c0_1 = arith.constant 0 : index
    %0 = vector.load %arg1[%c0, %c0_0, %c0_1] : memref<1x12x128xf32, #tpu.memory_space<vmem>>, vector<1x12x128xf32>
    %1 = vector.shape_cast %0 : vector<1x12x128xf32> to vector<12x128xf32>
    %2 = vector.extract_strided_slice %1 {offsets = [0, 0], sizes = [8, 128], strides = [1, 1]} : vector<12x128xf32> to vector<8x128xf32>
    %3 = vector.extract_strided_slice %1 {offsets = [1, 0], sizes = [8, 128], strides = [1, 1]} : vector<12x128xf32> to vector<8x128xf32>
    %4 = vector.extract_strided_slice %1 {offsets = [2, 0], sizes = [8, 128], strides = [1, 1]} : vector<12x128xf32> to vector<8x128xf32>
    %5 = vector.extract_strided_slice %1 {offsets = [3, 0], sizes = [8, 128], strides = [1, 1]} : vector<12x128xf32> to vector<8x128xf32>
    %6 = vector.extract_strided_slice %1 {offsets = [4, 0], sizes = [8, 128], strides = [1, 1]} : vector<12x128xf32> to vector<8x128xf32>
    %7 = tpu.concatenate %2, %3, %4, %5, %6 in 1 : vector<8x128xf32>, vector<8x128xf32>, vector<8x128xf32>, vector<8x128xf32>, vector<8x128xf32> -> vector<8x640xf32>
    %8 = arith.truncf %7 : vector<8x640xf32> to vector<8x640xbf16>
    %c0_2 = arith.constant 0 : index
    %c0_3 = arith.constant 0 : index
    %9 = vector.load %arg2[%c0_2, %c0_3] : memref<640x128xbf16, #tpu.memory_space<vmem>>, vector<640x128xbf16>
    %cst = arith.constant dense<0.000000e+00> : vector<8x128xf32>
    %10 = tpu.matmul %8, %9, %cst {dimension_numbers = #tpu.dot_dimension_numbers<[1], [0], [0], [1], [0, 0, 1, 1], [], []>} : vector<8x640xbf16>, vector<640x128xbf16>, vector<8x128xf32> -> vector<8x128xf32>
    %c0_4 = arith.constant 0 : index
    %c0_5 = arith.constant 0 : index
    %11 = vector.load %arg3[%c0_4, %c0_5] : memref<1x128xf32, #tpu.memory_space<vmem>>, vector<1x128xf32>
    %12 = vector.broadcast %11 : vector<1x128xf32> to vector<8x128xf32>
    %13 = arith.addf %10, %12 : vector<8x128xf32>
    %cst_6 = arith.constant 0.000000e+00 : f32
    %14 = vector.broadcast %cst_6 : f32 to vector<8x128xf32>
    %15 = arith.maximumf %13, %14 : vector<8x128xf32>
    %cst_7 = arith.constant 0.000000e+00 : f32
    %16 = vector.broadcast %cst_7 : f32 to vector<2x128xf32>
    %17 = tpu.concatenate %16, %15, %16 in 0 : vector<2x128xf32>, vector<8x128xf32>, vector<2x128xf32> -> vector<12x128xf32>
    %18 = vector.extract_strided_slice %17 {offsets = [0, 0], sizes = [8, 128], strides = [1, 1]} : vector<12x128xf32> to vector<8x128xf32>
    %19 = vector.extract_strided_slice %17 {offsets = [1, 0], sizes = [8, 128], strides = [1, 1]} : vector<12x128xf32> to vector<8x128xf32>
    %20 = vector.extract_strided_slice %17 {offsets = [2, 0], sizes = [8, 128], strides = [1, 1]} : vector<12x128xf32> to vector<8x128xf32>
    %21 = vector.extract_strided_slice %17 {offsets = [3, 0], sizes = [8, 128], strides = [1, 1]} : vector<12x128xf32> to vector<8x128xf32>
    %22 = vector.extract_strided_slice %17 {offsets = [4, 0], sizes = [8, 128], strides = [1, 1]} : vector<12x128xf32> to vector<8x128xf32>
    %23 = tpu.concatenate %18, %19, %20, %21, %22 in 1 : vector<8x128xf32>, vector<8x128xf32>, vector<8x128xf32>, vector<8x128xf32>, vector<8x128xf32> -> vector<8x640xf32>
    %24 = arith.truncf %23 : vector<8x640xf32> to vector<8x640xbf16>
    %c0_8 = arith.constant 0 : index
    %c0_9 = arith.constant 0 : index
    %25 = vector.load %arg4[%c0_8, %c0_9] : memref<640x128xbf16, #tpu.memory_space<vmem>>, vector<640x128xbf16>
    %cst_10 = arith.constant dense<0.000000e+00> : vector<8x128xf32>
    %26 = tpu.matmul %24, %25, %cst_10 {dimension_numbers = #tpu.dot_dimension_numbers<[1], [0], [0], [1], [0, 0, 1, 1], [], []>} : vector<8x640xbf16>, vector<640x128xbf16>, vector<8x128xf32> -> vector<8x128xf32>
    %c0_11 = arith.constant 0 : index
    %c0_12 = arith.constant 0 : index
    %27 = vector.load %arg5[%c0_11, %c0_12] : memref<1x128xf32, #tpu.memory_space<vmem>>, vector<1x128xf32>
    %28 = vector.broadcast %27 : vector<1x128xf32> to vector<8x128xf32>
    %29 = arith.addf %26, %28 : vector<8x128xf32>
    %cst_13 = arith.constant 0.000000e+00 : f32
    %30 = vector.broadcast %cst_13 : f32 to vector<8x128xf32>
    %31 = arith.maximumf %29, %30 : vector<8x128xf32>
    %cst_14 = arith.constant 0.000000e+00 : f32
    %32 = vector.broadcast %cst_14 : f32 to vector<2x128xf32>
    %33 = tpu.concatenate %32, %31, %32 in 0 : vector<2x128xf32>, vector<8x128xf32>, vector<2x128xf32> -> vector<12x128xf32>
    %34 = vector.extract_strided_slice %33 {offsets = [0, 0], sizes = [8, 128], strides = [1, 1]} : vector<12x128xf32> to vector<8x128xf32>
    %35 = vector.extract_strided_slice %33 {offsets = [1, 0], sizes = [8, 128], strides = [1, 1]} : vector<12x128xf32> to vector<8x128xf32>
    %36 = vector.extract_strided_slice %33 {offsets = [2, 0], sizes = [8, 128], strides = [1, 1]} : vector<12x128xf32> to vector<8x128xf32>
    %37 = vector.extract_strided_slice %33 {offsets = [3, 0], sizes = [8, 128], strides = [1, 1]} : vector<12x128xf32> to vector<8x128xf32>
    %38 = vector.extract_strided_slice %33 {offsets = [4, 0], sizes = [8, 128], strides = [1, 1]} : vector<12x128xf32> to vector<8x128xf32>
    %39 = tpu.concatenate %34, %35, %36, %37, %38 in 1 : vector<8x128xf32>, vector<8x128xf32>, vector<8x128xf32>, vector<8x128xf32>, vector<8x128xf32> -> vector<8x640xf32>
    %40 = arith.truncf %39 : vector<8x640xf32> to vector<8x640xbf16>
    %c0_15 = arith.constant 0 : index
    %c0_16 = arith.constant 0 : index
    %41 = vector.load %arg6[%c0_15, %c0_16] : memref<640x128xbf16, #tpu.memory_space<vmem>>, vector<640x128xbf16>
    %cst_17 = arith.constant dense<0.000000e+00> : vector<8x128xf32>
    %42 = tpu.matmul %40, %41, %cst_17 {dimension_numbers = #tpu.dot_dimension_numbers<[1], [0], [0], [1], [0, 0, 1, 1], [], []>} : vector<8x640xbf16>, vector<640x128xbf16>, vector<8x128xf32> -> vector<8x128xf32>
    %c0_18 = arith.constant 0 : index
    %c0_19 = arith.constant 0 : index
    %43 = vector.load %arg7[%c0_18, %c0_19] : memref<1x128xf32, #tpu.memory_space<vmem>>, vector<1x128xf32>
    %44 = vector.broadcast %43 : vector<1x128xf32> to vector<8x128xf32>
    %45 = arith.addf %42, %44 : vector<8x128xf32>
    %cst_20 = arith.constant 0.000000e+00 : f32
    %46 = vector.broadcast %cst_20 : f32 to vector<8x128xf32>
    %47 = arith.maximumf %45, %46 : vector<8x128xf32>
    %48 = arith.truncf %47 : vector<8x128xf32> to vector<8x128xbf16>
    %c0_21 = arith.constant 0 : index
    %c0_22 = arith.constant 0 : index
    %49 = vector.load %arg8[%c0_21, %c0_22] : memref<8x128xbf16, #tpu.memory_space<vmem>>, vector<8x128xbf16>
    tpu.vector_store %arg8[%c0_21, %c0_22], %48 {strides = array<i32>} : memref<8x128xbf16, #tpu.memory_space<vmem>>, vector<8x128xbf16>,
    return
  }
  func.func @transform_0(%arg0: i32) -> (i32, i32, i32) {
    %c0_i32 = arith.constant 0 : i32
    %c0_i32_0 = arith.constant 0 : i32
    %c0_i32_1 = arith.constant 0 : i32
    return %arg0, %c0_i32, %c0_i32_0 : i32, i32, i32
  }
  func.func @transform_1(%arg0: i32) -> (i32, i32) {
    %c0_i32 = arith.constant 0 : i32
    %c0_i32_0 = arith.constant 0 : i32
    %c0_i32_1 = arith.constant 0 : i32
    return %c0_i32, %c0_i32_0 : i32, i32
  }
  func.func @transform_2(%arg0: i32) -> (i32, i32) {
    %c0_i32 = arith.constant 0 : i32
    %c0_i32_0 = arith.constant 0 : i32
    %c0_i32_1 = arith.constant 0 : i32
    return %c0_i32, %c0_i32_0 : i32, i32
  }
  func.func @transform_3(%arg0: i32) -> (i32, i32) {
    %c0_i32 = arith.constant 0 : i32
    %c0_i32_0 = arith.constant 0 : i32
    %c0_i32_1 = arith.constant 0 : i32
    return %c0_i32, %c0_i32_0 : i32, i32
  }
  func.func @transform_4(%arg0: i32) -> (i32, i32) {
    %c0_i32 = arith.constant 0 : i32
    %c0_i32_0 = arith.constant 0 : i32
    %c0_i32_1 = arith.constant 0 : i32
    return %c0_i32, %c0_i32_0 : i32, i32
  }
  func.func @transform_5(%arg0: i32) -> (i32, i32) {
    %c0_i32 = arith.constant 0 : i32
    %c0_i32_0 = arith.constant 0 : i32
    %c0_i32_1 = arith.constant 0 : i32
    return %c0_i32, %c0_i32_0 : i32, i32
  }
  func.func @transform_6(%arg0: i32) -> (i32, i32) {
    %c0_i32 = arith.constant 0 : i32
    %c0_i32_0 = arith.constant 0 : i32
    %c0_i32_1 = arith.constant 0 : i32
    return %c0_i32, %c0_i32_0 : i32, i32
  }
  func.func @transform_7(%arg0: i32) -> (i32, i32) {
    %c0_i32 = arith.constant 0 : i32
    %c0_i32_0 = arith.constant 0 : i32
    return %c0_i32, %arg0 : i32, i32
  }
}

</mosaic_0001>

<bundles_post_ra>
// kernel: tpu_custom_call.1
= control target key start
LH: loop header
LB: loop body
LE: loop exit
PB: predicated region body
PF: predicated region fallthrough
CT: control target
= control target key end

     0   :  { %s2781_s0 = inlined_call_operand.vmem [shape: f32[2,12,128], index: 0, kind: input, shape index: {}]   ;;  %s2782_s1 = inlined_call_operand.hbm [shape: bf16[640,128], index: 1, kind: input, shape index: {}]   ;;  %s2783_s2 = inlined_call_operand.vmem [shape: f32[1,128], index: 2, kind: input, shape index: {}]   ;;  %s2784_s3 = inlined_call_operand.hbm [shape: bf16[640,128], index: 3, kind: input, shape index: {}]   ;;  %s2785_s4 = inlined_call_operand.vmem [shape: f32[1,128], index: 4, kind: input, shape index: {}]   ;;  %s2786_s5 = inlined_call_operand.hbm [shape: bf16[640,128], index: 5, kind: input, shape index: {}]   ;;  %s2787_s6 = inlined_call_operand.vmem [shape: f32[1,128], index: 6, kind: input, shape index: {}]   ;;  %s2788_s7 = inlined_call_operand.hbm [shape: bf16[8,256], index: 7, kind: output, shape index: {}]  }
   0x1   :  { %2789 = sst [smem:[#allocation12_spill]] %s2782_s1 }
   0x2   :  { %12 = vsyncpa [#allocation3], 0 }
   0x3   :  { %13 = vsyncpa [#allocation6], 0 }
   0x4   :  { %14 = vsyncpa [#allocation4], 0 }
   0x5   :  { %16 = vsyncpa [#allocation4 + $0x1], 0  ;;  %s2601_s24 = smov 0   ;;  %s2603_s25 = smov 0  }
   0x6   :  { %s2605_s26 = smov 0   ;;  %s2607_s27 = smov 0  }
   0x7 LB: > { %s2622_s28 = sadd.s32 4294967295, %s2554_s27   ;;  %s1691_s29 = sadd.s32 4294967294, %s2554_s27   ;;  %s2554_s27 = sphi %s2607_s27, %s2800_s27   ;;  %s2550_s26 = sphi %s2605_s26, %s2799_s26   ;;  %s2546_s25 = sphi %s2603_s25, %s2798_s25   ;;  %s2542_s24 = sphi %s2601_s24, %s2797_s24  }
   0x8   : > { %s2626_s30 = sadd.s32 1, %s2554_s27   ;;  %s181_s8 = sadd.s32 1, %s2550_s26 }
   0x9   : > { %s178_s9 = ssub.s32 %s2554_s27, %s2626_s30  ;;  %p191_p0 = scmp.ne.s32.totalorder %s2550_s26, %s2546_s25 }
   0xa   : > { %p179_p1 = scmp.eq.s32.totalorder %s178_s9, 0  ;;  %p192_p2 = scmp.eq.s32.totalorder %s2622_s28, 1 }
   0xb   : > { %p197_p3 = scmp.ne.s32.totalorder %s2546_s25, %s2542_s24  ;;  %p198_p4 = scmp.eq.s32.totalorder %s1691_s29, 1 }
   0xc   : > { %s2637_s10 = scalar_select %p179_p1, %s2550_s26, %s181_s8  }
   0xd   : > { %p2639_p5 = por %p192_p2, %p191_p0  ;;  %p2643_p6 = por %p198_p4, %p197_p3 }
   0xe   : > { %p1692_p7 = scmp.ge.s32.totalorder %s2554_s27, 1  ;;  %p205_p8 = scmp.lt.s32.totalorder %s2554_s27, 3 }
   0xf   : > { %p2347_p9 = scmp.eq.s32.totalorder %s2622_s28, 0  ;;  %s233_s16 = sshll.u32 %s2784_s3, 4  ;;  %s234_s16 = int_to_ptr.hbm [resolvable:$true] %s233_s16 }
  0x10   : > { %p2650_p10 = pnand %p1692_p7, %p205_p8  ;;  %s2793_s1 = sld [smem:[#allocation12_spill]] }
  0x11   : > { %s2556_s21 = smov [#allocation5]   ;;  %s2557_s23 = smov 64  }
  0x12   : > { %p2333_p11 = pneg %p2650_p10  ;;  %s235_s22 = sshll.u32 %s2556_s21, 4  ;;  %s236_s22 = int_to_ptr.vmem [resolvable:$true] %s235_s22 }
  0x13   : > { %s2558_s29 = smov 4   ;;  %s2559_s8 = smov [#allocation2]  }
  0x14   : > { %p2664_p12 = pnand %p2347_p9, %p2333_p11  ;;  %s218_s9 = sshll.u32 %s2559_s8, 4  ;;  %s219_s9 = int_to_ptr.vmem [resolvable:$true] %s218_s9 }
  0x15   : > { %s250_s17 = sshll.u32 %s2786_s5, 4  ;;  %s2560_s18 = smov [#allocation7]   ;;  %s251_s17 = int_to_ptr.hbm [resolvable:$true] %s250_s17 }
  0x16   : > { %s216_s19 = sshll.u32 %s2793_s1, 4  ;;  %s252_s1 = sshll.u32 %s2560_s18, 4  ;;  %s217_s19 = int_to_ptr.hbm [resolvable:$true] %s216_s19  ;;  %s253_s1 = int_to_ptr.vmem [resolvable:$true] %s252_s1 }
  0x17   : > { %2339 = dma.hbm_to_vmem [thread:$0]  (!%p2664_p12), %s234_s16, 5120, %s236_s22, [#allocation6], %s2557_s23, %s2557_s23, %s2558_s29  }
  0x18   : > { %2336 = dma.hbm_to_vmem [thread:$0]  (!%p2664_p12), %s217_s19, 5120, %s219_s9, [#allocation3], %s2557_s23, %s2557_s23, %s2558_s29  }
  0x19   : > { %2342 = dma.hbm_to_vmem [thread:$0]  (!%p2664_p12), %s251_s17, 5120, %s253_s1, [#allocation6], %s2557_s23, %s2557_s23, %s2558_s29  }
  0x1a   : > { %279 = sbr.rel (%p2650_p10) target bundleno = 540 (0x21c), region = 48 }
  0x1f   : > { %2529 = dma.done.wait (%p2347_p9), [#allocation3], 5120  }
  0x20   : > { %2531 = vsyncadd (%p2347_p9), [#allocation3], 4294962176 }
  0x21   : > { %2533 = dma.done.wait (%p2347_p9), [#allocation6], 10240  }
  0x22   : > { %2535 = vsyncadd (%p2347_p9), [#allocation6], 4294957056  ;;  %v2206_v0 = vld [vmem:[#allocation2 + $0x38] sm:$0xff]  ;;  %v2205_v3 = vld [vmem:[#allocation2 + $0x30] sm:$0xff]  ;;  %p322_p13 = scmp.lt.s32.totalorder %s2622_s28, 1  ;;  %vm336_vm0 = vcmask 1045504  }
  0x23   : > { %v2222_v1 = vld [vmem:[#allocation2 + $0xb8] sm:$0xff]  ;;  %680 = vmatpush.bf16.msra.mxu0 %v2206_v0  ;;  %v2221_v5 = vld [vmem:[#allocation2 + $0xb0] sm:$0xff]  ;;  %v2204_v8 = vld [vmem:[#allocation2 + $0x28] sm:$0xff]  ;;  %vm341_vm1 = vcmask 1044480   ;;  %vm331_vm2 = vcmask 1046528   ;;  %vm346_vm3 = vcmask 1043456  }
  0x24   : > { %v2230_v2 = vld [vmem:[#allocation2 + $0xf8] sm:$0xff]  ;;  %706 = vmatpush.bf16.msra.mxu2 %v2222_v1  ;;  %v2229_v6 = vld [vmem:[#allocation2 + $0xf0] sm:$0xff]  ;;  %v2220_v9 = vld [vmem:[#allocation2 + $0xa8] sm:$0xff]  ;;  %s323_s1 = scalar_select %p322_p13, %s2622_s28, 1  ;;  %vm749_vm4 = vcmask 1041408  }
  0x25   : > { %v2214_v4 = vld [vmem:[#allocation2 + $0x78] sm:$0xff]  ;;  %719 = vmatpush.bf16.msra.mxu3 %v2230_v2  ;;  %v2213_v7 = vld [vmem:[#allocation2 + $0x70] sm:$0xff]  ;;  %v2228_v10 = vld [vmem:[#allocation2 + $0xe8] sm:$0xff]  ;;  %s319_s14 = sand.u32 1, %s2546_s25   ;;  %s2195_s17 = sshll.u32 %s2622_s28, 2 }
  0x26   : > { %693 = vmatpush.bf16.msra.mxu1 %v2214_v4  ;;  %v2212_v11 = vld [vmem:[#allocation2 + $0x68] sm:$0xff]  ;;  %v2203_v12 = vld [vmem:[#allocation2 + $0x20] sm:$0xff]  ;;  %v2202_v16 = vld [vmem:[#allocation2 + $0x18] sm:$0xff]  ;;  %s2198_s13 = sshll.u32 %s323_s1, 4  ;;  %s1701_s15 = sshll.u32 %s319_s14, 2 }
  0x27   : > { %681 = vmatpush.bf16.msra.mxu0 %v2205_v3  ;;  %v2219_v13 = vld [vmem:[#allocation2 + $0xa0] sm:$0xff]  ;;  %v2218_v17 = vld [vmem:[#allocation2 + $0x98] sm:$0xff]  ;;  %v2201_v20 = vld [vmem:[#allocation2 + $0x10] sm:$0xff]  ;;  %s326_s20 = scalar_lea.vmem %s2781_s0, %s2198_s13  ;;  %s1596_s13 = scalar_lea.hbm %s2788_s7, %s2195_s17 }
  0x28   : > { %707 = vmatpush.bf16.msra.mxu2 %v2221_v5  ;;  %v2227_v14 = vld [vmem:[#allocation2 + $0xe0] sm:$0xff]  ;;  %v2226_v18 = vld [vmem:[#allocation2 + $0xd8] sm:$0xff]  ;;  %v2217_v21 = vld [vmem:[#allocation2 + $0x90] sm:$0xff]  ;;  %s321_s16 = scalar_lea.vmem [#allocation8], %s1701_s15  ;;  %s1586_s21 = scalar_lea.sflag [#allocation4], %s319_s14 }
  0x29   : > { %720 = vmatpush.bf16.msra.mxu3 %v2229_v6  ;;  %v2211_v15 = vld [vmem:[#allocation2 + $0x60] sm:$0xff]  ;;  %v2210_v19 = vld [vmem:[#allocation2 + $0x58] sm:$0xff]  ;;  %v2225_v22 = vld [vmem:[#allocation2 + $0xd0] sm:$0xff]  ;;  %s1598_s19 = sshll.u32 %s321_s16, 4  ;;  %s2504_s8 = scalar_lea.hbm %s2788_s7, 8  ;;  %s1599_s19 = int_to_ptr.vmem [resolvable:$true] %s1598_s19 }
  0x2a   : > { %694 = vmatpush.bf16.msra.mxu1 %v2213_v7  ;;  %v2209_v23 = vld [vmem:[#allocation2 + $0x50] sm:$0xff]  ;;  %v2692_v24 = vld [vmem:[%s326_s20 + $0x8] sm:$0xf]  ;;  %v2694_v26 = vld [vmem:[%s326_s20] sm:$0xff]  ;;  %s1600_s20 = sshll.u32 %s1596_s13, 4  ;;  %s1601_s20 = int_to_ptr.hbm [resolvable:$true] %s1600_s20 }
  0x2b   : > { %682 = vmatpush.bf16.msra.mxu0 %v2204_v8  ;;  %v2200_v25 = vld [vmem:[#allocation2 + $0x8] sm:$0xff]  ;;  %v337_v29 = vrot.slane %v2694_v26, 2  ;;  %v338_v30 = vrot.slane %v2692_v24, 2  ;;  %v342_v32 = vrot.slane %v2694_v26, 3  ;;  %v343_v33 = vrot.slane %v2692_v24, 3  ;;  %v2199_v36 = vld [vmem:[#allocation2] sm:$0xff]  ;;  %vm2714_vm5 = vmneg %vm749_vm4 }
  0x2c   : > { %708 = vmatpush.bf16.msra.mxu2 %v2220_v9  ;;  %v2216_v27 = vld [vmem:[#allocation2 + $0x88] sm:$0xff]  ;;  %v332_v34 = vrot.slane %v2694_v26, 1  ;;  %v333_v35 = vrot.slane %v2692_v24, 1  ;;  %v2238_v37 = vld [vmem:[#allocation2 + $0x138] sm:$0xff]  ;;  %v2215_v38 = vld [vmem:[#allocation2 + $0x80] sm:$0xff]  ;;  %v351_v43 = vpack.c.bf16 %v2694_v26, %v2694_v26  ;;  %v347_v57 = vrot.slane %v2694_v26, 4 }
  0x2d   : > { %721 = vmatpush.bf16.msra.mxu3 %v2228_v10  ;;  %v2224_v28 = vld [vmem:[#allocation2 + $0xc8] sm:$0xff]  ;;  %v339_v39 = vsel %vm336_vm0, %v337_v29, %v338_v30  ;;  %v2223_v40 = vld [vmem:[#allocation2 + $0xc0] sm:$0xff]  ;;  %v344_v42 = vsel %vm341_vm1, %v342_v32, %v343_v33  ;;  %v2246_v46 = vld [vmem:[#allocation5 + $0x38] sm:$0xff]  ;;  %v348_v58 = vrot.slane %v2692_v24, 4  ;;  %s2498_s22 = sshra.s32 %s1601_s20, 4  ;;  %s2499_s22 = int_to_ptr.hbm [resolvable:$true] %s2498_s22 }
  0x2e   : > { %695 = vmatpush.bf16.msra.mxu1 %v2212_v11  ;;  %v2208_v31 = vld [vmem:[#allocation2 + $0x48] sm:$0xff]  ;;  %v2207_v41 = vld [vmem:[#allocation2 + $0x40] sm:$0xff]  ;;  %v334_v44 = vsel %vm331_vm2, %v332_v34, %v333_v35  ;;  %v353_v45 = vpack.c.bf16 %v339_v39, %v339_v39  ;;  %v2237_v47 = vld [vmem:[#allocation2 + $0x130] sm:$0xff]  ;;  %v354_v48 = vpack.c.bf16 %v344_v42, %v344_v42  ;;  %s2500_s28 = scalar_lea.hbm %s2499_s22, 4  ;;  %p2505_p3 = scmp.lt.s32.totalorder %s2499_s22, %s2788_s7 }
  0x2f   : > { %683 = vmatpush.bf16.msra.mxu0 %v2203_v12  ;;  %v352_v49 = vpack.c.bf16 %v334_v44, %v334_v44  ;;  %v2245_v50 = vld [vmem:[#allocation5 + $0x30] sm:$0xff]  ;;  %v2236_v51 = vld [vmem:[#allocation2 + $0x128] sm:$0xff]  ;;  %v2235_v53 = vld [vmem:[#allocation2 + $0x120] sm:$0xff]  ;;  %v349_v60 = vsel %vm346_vm3, %v347_v57, %v348_v58  ;;  %p2501_p0 = scmp.ne.s32.totalorder %s2499_s22, %s2500_s28  ;;  %p2506_p4 = scmp.lt.s32.totalorder %s2504_s8, %s2500_s28 }
  0x30   : > { %709 = vmatpush.bf16.msra.mxu2 %v2219_v13  ;;  %v2244_v52 = vld [vmem:[#allocation5 + $0x28] sm:$0xff]  ;;  %v2234_v54 = vld [vmem:[#allocation2 + $0x118] sm:$0xff]  ;;  %v2233_v55 = vld [vmem:[#allocation2 + $0x110] sm:$0xff]  ;;  %v355_v61 = vpack.c.bf16 %v349_v60, %v349_v60 }
  0x31   : > { %722 = vmatpush.bf16.msra.mxu3 %v2227_v14  ;;  %v2232_v56 = vld [vmem:[#allocation2 + $0x108] sm:$0xff]  ;;  %v2231_v59 = vld [vmem:[#allocation2 + $0x100] sm:$0xff]  ;;  %v2254_v63 = vld [vmem:[#allocation5 + $0x78] sm:$0xff]  ;;  %p2502_p1 = pnand %p2501_p0, %p2639_p5  ;;  %p2507_p7 = por %p2506_p4, %p2505_p3 }
  0x32   : > { %696 = vmatpush.bf16.msra.mxu1 %v2211_v15  ;;  %v2243_v62 = vld [vmem:[#allocation5 + $0x20] sm:$0xff]  ;;  %v2262_v0 = vld [vmem:[#allocation5 + $0xb8] sm:$0xff]  ;;  %v2241_v3 = vld [vmem:[#allocation5 + $0x10] sm:$0xff] }
  0x33   : > { %684 = vmatpush.bf16.msra.mxu0 %v2202_v16  ;;  %v2270_v1 = vld [vmem:[#allocation5 + $0xf8] sm:$0xff]  ;;  %v2253_v4 = vld [vmem:[#allocation5 + $0x70] sm:$0xff]  ;;  %v2252_v7 = vld [vmem:[#allocation5 + $0x68] sm:$0xff]  ;;  %p2503_p2 = pneg %p2502_p1 }
  0x34   : > { %710 = vmatpush.bf16.msra.mxu2 %v2218_v17  ;;  %v2242_v2 = vld [vmem:[#allocation5 + $0x18] sm:$0xff]  ;;  %v2261_v5 = vld [vmem:[#allocation5 + $0xb0] sm:$0xff]  ;;  %v2260_v8 = vld [vmem:[#allocation5 + $0xa8] sm:$0xff] }
  0x35   : > { %723 = vmatpush.bf16.msra.mxu3 %v2226_v18  ;;  %v2269_v6 = vld [vmem:[#allocation5 + $0xf0] sm:$0xff]  ;;  %v2240_v9 = vld [vmem:[#allocation5 + $0x8] sm:$0xff]  ;;  %v2251_v11 = vld [vmem:[#allocation5 + $0x60] sm:$0xff]  ;;  %p2508_p8 = pnand %p2507_p7, %p2503_p2 }
  0x36   : > { %697 = vmatpush.bf16.msra.mxu1 %v2210_v19  ;;  %v2268_v10 = vld [vmem:[#allocation5 + $0xe8] sm:$0xff]  ;;  %v2259_v12 = vld [vmem:[#allocation5 + $0xa0] sm:$0xff]  ;;  %v2278_v15 = vld [vmem:[#allocation5 + $0x138] sm:$0xff] }
  0x37   : > { %685 = vmatpush.bf16.msra.mxu0 %v2201_v20  ;;  %v2239_v13 = vld [vmem:[#allocation5] sm:$0xff]  ;;  %v2250_v16 = vld [vmem:[#allocation5 + $0x58] sm:$0xff]  ;;  %v2277_v19 = vld [vmem:[#allocation5 + $0x130] sm:$0xff] }
  0x38   : > { %711 = vmatpush.bf16.msra.mxu2 %v2217_v21  ;;  %v2267_v14 = vld [vmem:[#allocation5 + $0xe0] sm:$0xff]  ;;  %v2258_v17 = vld [vmem:[#allocation5 + $0x98] sm:$0xff]  ;;  %v2249_v20 = vld [vmem:[#allocation5 + $0x50] sm:$0xff] }
  0x39   : > { %724 = vmatpush.bf16.msra.mxu3 %v2225_v22  ;;  %v2266_v18 = vld [vmem:[#allocation5 + $0xd8] sm:$0xff]  ;;  %v2257_v21 = vld [vmem:[#allocation5 + $0x90] sm:$0xff]  ;;  %v2256_v26 = vld [vmem:[#allocation5 + $0x88] sm:$0xff] }
  0x3a   : > { %698 = vmatpush.bf16.msra.mxu1 %v2209_v23  ;;  %v2265_v22 = vld [vmem:[#allocation5 + $0xd0] sm:$0xff]  ;;  %v2276_v23 = vld [vmem:[#allocation5 + $0x128] sm:$0xff]  ;;  %v2247_v30 = vld [vmem:[#allocation5 + $0x40] sm:$0xff] }
  0x3b   : > { %686 = vmatpush.bf16.msra.mxu0 %v2200_v25  ;;  %v2248_v25 = vld [vmem:[#allocation5 + $0x48] sm:$0xff]  ;;  %v2263_v32 = vld [vmem:[#allocation5 + $0xc0] sm:$0xff]  ;;  %v2274_v33 = vld [vmem:[#allocation5 + $0x118] sm:$0xff] }
  0x3c   : > { %712 = vmatpush.bf16.msra.mxu2 %v2216_v27  ;;  %v2264_v27 = vld [vmem:[#allocation5 + $0xc8] sm:$0xff]  ;;  %v2391_v39 = vld [vmem:[%s2783_s2] ss:$0 sm:$0xff]  ;;  %vm2026_vm6 = vmpackc.low %vm2714_vm5, %vm2714_vm5 }
  0x3d   : > { %725 = vmatpush.bf16.msra.mxu3 %v2224_v28  ;;  %v2275_v28 = vld [vmem:[#allocation5 + $0x120] sm:$0xff] }
  0x3e   : > { %699 = vmatpush.bf16.msra.mxu1 %v2208_v31  ;;  %v2255_v31 = vld [vmem:[#allocation5 + $0x80] sm:$0xff] }
  0x3f   : > { %687 = vmatpush.bf16.msra.mxu0 %v2199_v36  ;;  %v2271_v44 = vld [vmem:[#allocation5 + $0x100] sm:$0xff] }
  0x40   : > { %713 = vmatpush.bf16.msra.mxu2 %v2215_v38  ;;  %v2283_v57 = vld [vmem:[#allocation7 + $0x20] sm:$0xff] }
  0x41   : > { %726 = vmatpush.bf16.msra.mxu3 %v2223_v40  ;;  %v2272_v40 = vld [vmem:[#allocation5 + $0x108] sm:$0xff] }
  0x42   : > { %700 = vmatpush.bf16.msra.mxu1 %v2207_v41  ;;  %688 = vmatmul.bf16.vlgmr.msra.gmra.mxu0 %v351_v43 }
  0x43   : > { %732 = vmatpush.bf16.msrb.mxu0 %v2238_v37  ;;  %714 = vmatmul.bf16.vlgmr.msra.gmra.mxu2 %v353_v45  ;;  %v2273_v37 = vld [vmem:[#allocation5 + $0x110] sm:$0xff] }
  0x44   : > { %727 = vmatmul.bf16.vlgmr.msra.gmra.mxu3 %v354_v48  ;;  %1112 = vmatpush.bf16.msrb.mxu2 %v2254_v63  ;;  %v2282_v63 = vld [vmem:[#allocation7 + $0x18] sm:$0xff] }
  0x45   : > { %701 = vmatmul.bf16.vlgmr.msra.gmra.mxu1 %v352_v49  ;;  %1125 = vmatpush.bf16.msrb.mxu3 %v2262_v0  ;;  %v2285_v49 = vld [vmem:[#allocation7 + $0x30] sm:$0xff] }
  0x46   : > { %1099 = vmatpush.bf16.msrb.mxu1 %v2246_v46  ;;  %v2286_v46 = vld [vmem:[#allocation7 + $0x38] sm:$0xff] }
  0x47   : > { %733 = vmatpush.bf16.msrb.mxu0 %v2237_v47  ;;  %v2294_v47 = vld [vmem:[#allocation7 + $0x78] sm:$0xff] }
  0x48   : > { %1113 = vmatpush.bf16.msrb.mxu2 %v2253_v4 }
  0x49   : > { %1126 = vmatpush.bf16.msrb.mxu3 %v2261_v5 }
  0x4a   : > { %1100 = vmatpush.bf16.msrb.mxu1 %v2245_v50  ;;  %v2302_v50 = vld [vmem:[#allocation7 + $0xb8] sm:$0xff] }
  0x4b   : > { %734 = vmatpush.bf16.msrb.mxu0 %v2236_v51 }
  0x4c   : > { %1114 = vmatpush.bf16.msrb.mxu2 %v2252_v7 }
  0x4d   : > { %1127 = vmatpush.bf16.msrb.mxu3 %v2260_v8 }
  0x4e   : > { %1101 = vmatpush.bf16.msrb.mxu1 %v2244_v52  ;;  %v2284_v52 = vld [vmem:[#allocation7 + $0x28] sm:$0xff] }
  0x4f   : > { %735 = vmatpush.bf16.msrb.mxu0 %v2235_v53 }
  0x50   : > { %1115 = vmatpush.bf16.msrb.mxu2 %v2251_v11 }
  0x51   : > { %1128 = vmatpush.bf16.msrb.mxu3 %v2259_v12 }
  0x52   : > { %1102 = vmatpush.bf16.msrb.mxu1 %v2243_v62 }
  0x53   : > { %736 = vmatpush.bf16.msrb.mxu0 %v2234_v54 }
  0x54   : > { %1116 = vmatpush.bf16.msrb.mxu2 %v2250_v16 }
  0x55   : > { %1129 = vmatpush.bf16.msrb.mxu3 %v2258_v17  ;;  %v2281_v17 = vld [vmem:[#allocation7 + $0x10] sm:$0xff] }
  0x56   : > { %1103 = vmatpush.bf16.msrb.mxu1 %v2242_v2 }
  0x57   : > { %737 = vmatpush.bf16.msrb.mxu0 %v2233_v55 }
  0x58   : > { %1117 = vmatpush.bf16.msrb.mxu2 %v2249_v20  ;;  %v2309_v20 = vld [vmem:[#allocation7 + $0xf0] sm:$0xff] }
  0x59   : > { %1130 = vmatpush.bf16.msrb.mxu3 %v2257_v21  ;;  %v2280_v21 = vld [vmem:[#allocation7 + $0x8] sm:$0xff] }
  0x5a   : > { %1104 = vmatpush.bf16.msrb.mxu1 %v2241_v3 }
  0x5b   : > { %738 = vmatpush.bf16.msrb.mxu0 %v2232_v56 }
  0x5c   : > { %1118 = vmatpush.bf16.msrb.mxu2 %v2248_v25  ;;  %v2279_v25 = vld [vmem:[#allocation7] sm:$0xff] }
  0x5d   : > { %1131 = vmatpush.bf16.msrb.mxu3 %v2256_v26  ;;  %v2291_v26 = vld [vmem:[#allocation7 + $0x60] sm:$0xff] }
  0x5e   : > { %1105 = vmatpush.bf16.msrb.mxu1 %v2240_v9 }
  0x5f   : > { %739 = vmatpush.bf16.msrb.mxu0 %v2231_v59  ;;  %v2310_v59 = vld [vmem:[#allocation7 + $0xf8] sm:$0xff] }
  0x60   : > { %1119 = vmatpush.bf16.msrb.mxu2 %v2247_v30  ;;  %v2290_v30 = vld [vmem:[#allocation7 + $0x58] sm:$0xff] }
  0x61   : > { %1132 = vmatpush.bf16.msrb.mxu3 %v2255_v31  ;;  %v2298_v31 = vld [vmem:[#allocation7 + $0x98] sm:$0xff] }
  0x62   : > { %740 = vmatmul.bf16.vlgmr.msrb.gmra.mxu0 %v355_v61  ;;  %1106 = vmatpush.bf16.msrb.mxu1 %v2239_v13 }
  0x63   : > { %1138 = vmatpush.bf16.msra.mxu0 %v2270_v1 }
  0x64   : > { %1517 = vmatpush.bf16.msra.mxu2 %v2286_v46  ;;  %v2313_v46 = vld [vmem:[#allocation7 + $0x110] sm:$0xff] }
  0x65   : > { %1530 = vmatpush.bf16.msra.mxu3 %v2294_v47 }
  0x66   : > { %1151 = vmatpush.bf16.msra.mxu1 %v2278_v15 }
  0x67   : > { %1139 = vmatpush.bf16.msra.mxu0 %v2269_v6 }
  0x68   : > { %1518 = vmatpush.bf16.msra.mxu2 %v2285_v49 }
  0x6a   : > { %1152 = vmatpush.bf16.msra.mxu1 %v2277_v19  ;;  %v2301_v19 = vld [vmem:[#allocation7 + $0xb0] sm:$0xff] }
  0x6b   : > { %1140 = vmatpush.bf16.msra.mxu0 %v2268_v10 }
  0x6c   : > { %1519 = vmatpush.bf16.msra.mxu2 %v2284_v52 }
  0x6e   : > { %1153 = vmatpush.bf16.msra.mxu1 %v2276_v23  ;;  %v2300_v23 = vld [vmem:[#allocation7 + $0xa8] sm:$0xff] }
  0x6f   : > { %1141 = vmatpush.bf16.msra.mxu0 %v2267_v14 }
  0x70   : > { %1520 = vmatpush.bf16.msra.mxu2 %v2283_v57 }
  0x72   : > { %1154 = vmatpush.bf16.msra.mxu1 %v2275_v28  ;;  %v2307_v28 = vld [vmem:[#allocation7 + $0xe0] sm:$0xff] }
  0x73   : > { %1142 = vmatpush.bf16.msra.mxu0 %v2266_v18  ;;  %v2293_v18 = vld [vmem:[#allocation7 + $0x70] sm:$0xff] }
  0x74   : > { %1521 = vmatpush.bf16.msra.mxu2 %v2282_v63  ;;  %1531 = vmatpush.bf16.msra.mxu3 %v2293_v18 }
  0x76   : > { %1155 = vmatpush.bf16.msra.mxu1 %v2274_v33  ;;  %v2317_v33 = vld [vmem:[#allocation7 + $0x130] sm:$0xff] }
  0x77   : > { %1143 = vmatpush.bf16.msra.mxu0 %v2265_v22  ;;  %v2292_v22 = vld [vmem:[#allocation7 + $0x68] sm:$0xff] }
  0x78   : > { %1522 = vmatpush.bf16.msra.mxu2 %v2281_v17  ;;  %1532 = vmatpush.bf16.msra.mxu3 %v2292_v22 }
  0x7a   : > { %1156 = vmatpush.bf16.msra.mxu1 %v2273_v37  ;;  %v2316_v37 = vld [vmem:[#allocation7 + $0x128] sm:$0xff] }
  0x7b   : > { %1144 = vmatpush.bf16.msra.mxu0 %v2264_v27  ;;  %v2299_v27 = vld [vmem:[#allocation7 + $0xa0] sm:$0xff] }
  0x7c   : > { %1523 = vmatpush.bf16.msra.mxu2 %v2280_v21  ;;  %1533 = vmatpush.bf16.msra.mxu3 %v2291_v26 }
  0x7e   : > { %1157 = vmatpush.bf16.msra.mxu1 %v2272_v40  ;;  %v2304_v40 = vld [vmem:[#allocation7 + $0xc8] sm:$0xff] }
  0x7f   : > { %1145 = vmatpush.bf16.msra.mxu0 %v2263_v32  ;;  %v2306_v32 = vld [vmem:[#allocation7 + $0xd8] sm:$0xff] }
  0x80   : > { %1524 = vmatpush.bf16.msra.mxu2 %v2279_v25  ;;  %1534 = vmatpush.bf16.msra.mxu3 %v2290_v30  ;;  %v2393_v25 = vld [vmem:[%s2787_s6] ss:$0 sm:$0xff] }
  0x82   : > { %1158 = vmatpush.bf16.msra.mxu1 %v2271_v44  ;;  %v2303_v44 = vld [vmem:[#allocation7 + $0xc0] sm:$0xff] }
  0x83   : > { %1543 = vmatpush.bf16.msrb.mxu0 %v2302_v50  ;;  %v2311_v50 = vld [vmem:[#allocation7 + $0x100] sm:$0xff] }
  0x87   : > { %1544 = vmatpush.bf16.msrb.mxu0 %v2301_v19 }
  0x8b   : > { %1545 = vmatpush.bf16.msrb.mxu0 %v2300_v23 }
  0x8f   : > { %1546 = vmatpush.bf16.msrb.mxu0 %v2299_v27 }
  0x93   : > { %1547 = vmatpush.bf16.msrb.mxu0 %v2298_v31 }
  0xbf   : > { %v689_v24 = vpop.f32.mrf.mxu0 }
  0xc0   : > { %v690_v42 = vadd.f32 %v2391_v39, %v689_v24  ;;  %v2308_v24 = vld [vmem:[#allocation7 + $0xe8] sm:$0xff] }
  0xc1   : > { %v2296_v39 = vld [vmem:[#allocation7 + $0x88] sm:$0xff] }
  0xc2   : > { %v702_v29 = vpop.f32.mrf.mxu1 }
  0xc3   : > { %v703_v45 = vadd.f32 %v702_v29, %v690_v42  ;;  %v2318_v29 = vld [vmem:[#allocation7 + $0x138] sm:$0xff]  ;;  %v2287_v42 = vld [vmem:[#allocation7 + $0x40] sm:$0xff] }
  0xc6   : > { %v715_v34 = vpop.f32.mrf.mxu2 }
  0xc7   : > { %v691_v35 = vpop.f32.mrf.mxu0  ;;  %v728_v36 = vpop.f32.mrf.mxu3  ;;  %v716_v48 = vadd.f32 %v715_v34, %v703_v45  ;;  %v2289_v34 = vld [vmem:[#allocation7 + $0x50] sm:$0xff]  ;;  %v2314_v45 = vld [vmem:[#allocation7 + $0x118] sm:$0xff] }
  0xc8   : > { %v2297_v35 = vld [vmem:[#allocation7 + $0x90] sm:$0xff]  ;;  %1535 = vmatpush.bf16.msra.mxu3 %v2289_v34 }
  0xc9   : > { %v729_v51 = vadd.f32 %v728_v36, %v716_v48  ;;  %v2305_v36 = vld [vmem:[#allocation7 + $0xd0] sm:$0xff]  ;;  %1548 = vmatpush.bf16.msrb.mxu0 %v2297_v35  ;;  %v2312_v48 = vld [vmem:[#allocation7 + $0x108] sm:$0xff] }
  0xca   : > { %v704_v38 = vpop.f32.mrf.mxu1 }
  0xcb   : > { %v2288_v38 = vld [vmem:[#allocation7 + $0x48] sm:$0xff] }
  0xcc   : > { %1536 = vmatpush.bf16.msra.mxu3 %v2288_v38 }
  0xcd   : > { %1549 = vmatpush.bf16.msrb.mxu0 %v2296_v39 }
  0xce   : > { %v717_v41 = vpop.f32.mrf.mxu2 }
  0xcf   : > { %v730_v43 = vpop.f32.mrf.mxu3  ;;  %v2315_v41 = vld [vmem:[#allocation7 + $0x120] sm:$0xff] }
  0xd0   : > { %v2295_v43 = vld [vmem:[#allocation7 + $0x80] sm:$0xff]  ;;  %1537 = vmatpush.bf16.msra.mxu3 %v2287_v42 }
  0xd1   : > { %1550 = vmatpush.bf16.msrb.mxu0 %v2295_v43 }
  0xdf   : > { %v741_v53 = vpop.f32.mrf.mxu0 }
  0xe0   : > { %v742_v54 = vadd.f32 %v741_v53, %v729_v51  ;;  %v2392_v51 = vld [vmem:[%s2785_s4] ss:$0 sm:$0xff] }
  0xe2   : > { %v745_v55 = vmax.f32 %v742_v54, 0.0 }
  0xe4   : > { %v747_v58 = vrot.slane %v745_v55, 6 }
  0xe6   : > { %v750_v60 = vsel %vm749_vm4, 0.0, %v747_v58  ;;  %v751_v61 = vsel %vm749_vm4, %v747_v58, 0.0  ;;  %v2027_v62 = vpack.c.bf16 %v747_v58, %v747_v58 }
  0xe7   : > { %v762_v0 = vrot.slane %v750_v60, 3  ;;  %v763_v1 = vrot.slane %v751_v61, 3  ;;  %v743_v2 = vpop.f32.mrf.mxu0  ;;  %v754_v3 = vrot.slane %v750_v60, 1  ;;  %v755_v4 = vrot.slane %v751_v61, 1 }
  0xe8   : > { %2028 = vmatmul.msk.bf16.vlgmr.msrb.gmra.mxu1 %vm2026_vm6, %v2027_v62  ;;  %v758_v5 = vrot.slane %v750_v60, 2  ;;  %v759_v6 = vrot.slane %v751_v61, 2  ;;  %v766_v13 = vrot.slane %v750_v60, 4  ;;  %v767_v14 = vrot.slane %v751_v61, 4 }
  0xe9   : > { %v764_v7 = vsel %vm341_vm1, %v762_v0, %v763_v1  ;;  %1556 = vmatpush.bf16.msrb.mxu1 %v2310_v59  ;;  %v756_v8 = vsel %vm331_vm2, %v754_v3, %v755_v4 }
  0xea   : > { %v760_v9 = vsel %vm336_vm0, %v758_v5, %v759_v6  ;;  %v773_v10 = vpack.c.bf16 %v764_v7, %v764_v7  ;;  %v771_v11 = vpack.c.bf16 %v756_v8, %v756_v8  ;;  %v768_v15 = vsel %vm346_vm3, %v766_v13, %v767_v14 }
  0xeb   : > { %v772_v12 = vpack.c.bf16 %v760_v9, %v760_v9  ;;  %v774_v16 = vpack.c.bf16 %v768_v15, %v768_v15 }
  0xec   : > { %1146 = vmatmul.bf16.vlgmr.msra.gmra.mxu0 %v773_v10  ;;  %1120 = vmatmul.bf16.vlgmr.msrb.gmra.mxu2 %v771_v11 }
  0xed   : > { %1133 = vmatmul.bf16.vlgmr.msrb.gmra.mxu3 %v772_v12  ;;  %1557 = vmatpush.bf16.msrb.mxu1 %v2309_v20 }
  0xee   : > { %1569 = vmatpush.bf16.msrb.mxu2 %v2318_v29 }
  0xf1   : > { %1558 = vmatpush.bf16.msrb.mxu1 %v2308_v24 }
  0xf2   : > { %1570 = vmatpush.bf16.msrb.mxu2 %v2317_v33 }
  0xf5   : > { %1559 = vmatpush.bf16.msrb.mxu1 %v2307_v28 }
  0xf6   : > { %1571 = vmatpush.bf16.msrb.mxu2 %v2316_v37 }
  0xf8   : > { %1159 = vmatmul.bf16.vlgmr.msra.gmra.mxu1 %v774_v16 }
  0xf9   : > { %1560 = vmatpush.bf16.msrb.mxu1 %v2306_v32 }
  0xfa   : > { %1572 = vmatpush.bf16.msrb.mxu2 %v2315_v41 }
  0xfd   : > { %1561 = vmatpush.bf16.msrb.mxu1 %v2305_v36 }
  0xfe   : > { %1573 = vmatpush.bf16.msrb.mxu2 %v2314_v45 }
 0x101   : > { %1562 = vmatpush.bf16.msrb.mxu1 %v2304_v40 }
 0x102   : > { %1574 = vmatpush.bf16.msrb.mxu2 %v2313_v46 }
 0x105   : > { %1563 = vmatpush.bf16.msrb.mxu1 %v2303_v44 }
 0x106   : > { %1575 = vmatpush.bf16.msrb.mxu2 %v2312_v48 }
 0x10a   : > { %1576 = vmatpush.bf16.msrb.mxu2 %v2311_v50 }
 0x165   : > { %v1108_v47 = vpop.f32.mrf.mxu1 }
 0x166   : > { %v1109_v53 = vadd.f32 %v2392_v51, %v1108_v47 }
 0x169   : > { %v1147_v49 = vpop.f32.mrf.mxu0 }
 0x16d   : > { %v1110_v52 = vpop.f32.mrf.mxu1 }
 0x16f   : > { %v1121_v54 = vpop.f32.mrf.mxu2 }
 0x170   : > { %v1134_v55 = vpop.f32.mrf.mxu3  ;;  %v1122_v57 = vadd.f32 %v1121_v54, %v1109_v53 }
 0x171   : > { %v1149_v58 = vpop.f32.mrf.mxu0 }
 0x172   : > { %v1135_v59 = vadd.f32 %v1134_v55, %v1122_v57 }
 0x174   : > { %v1148_v60 = vadd.f32 %v1147_v49, %v1135_v59 }
 0x175   : > { %v1160_v61 = vpop.f32.mrf.mxu1 }
 0x176   : > { %v1161_v62 = vadd.f32 %v1160_v61, %v1148_v60 }
 0x177   : > { %v1123_v63 = vpop.f32.mrf.mxu2 }
 0x178   : > { %v1136_v0 = vpop.f32.mrf.mxu3  ;;  %v1164_v1 = vmax.f32 %v1161_v62, 0.0 }
 0x17a   : > { %v1166_v2 = vrot.slane %v1164_v1, 6 }
 0x17c   : > { %v1168_v3 = vsel %vm749_vm4, 0.0, %v1166_v2  ;;  %v1169_v4 = vsel %vm749_vm4, %v1166_v2, 0.0  ;;  %v2192_v5 = vpack.c.bf16 %v1166_v2, %v1166_v2 }
 0x17d   : > { %v1162_v6 = vpop.f32.mrf.mxu1  ;;  %v1172_v7 = vrot.slane %v1168_v3, 1  ;;  %v1173_v8 = vrot.slane %v1169_v4, 1  ;;  %v1176_v9 = vrot.slane %v1168_v3, 2  ;;  %v1177_v10 = vrot.slane %v1169_v4, 2 }
 0x17e   : > { %v1180_v11 = vrot.slane %v1168_v3, 3  ;;  %v1181_v12 = vrot.slane %v1169_v4, 3  ;;  %2193 = vmatmul.msk.bf16.vlgmr.msra.gmra.mxu2 %vm2026_vm6, %v2192_v5  ;;  %v1184_v19 = vrot.slane %v1168_v3, 4  ;;  %v1185_v20 = vrot.slane %v1169_v4, 4 }
 0x17f   : > { %v1174_v13 = vsel %vm331_vm2, %v1172_v7, %v1173_v8  ;;  %v1178_v14 = vsel %vm336_vm0, %v1176_v9, %v1177_v10 }
 0x180   : > { %v1189_v15 = vpack.c.bf16 %v1174_v13, %v1174_v13  ;;  %v1190_v16 = vpack.c.bf16 %v1178_v14, %v1178_v14  ;;  %v1182_v17 = vsel %vm341_vm1, %v1180_v11, %v1181_v12  ;;  %v1186_v21 = vsel %vm346_vm3, %v1184_v19, %v1185_v20 }
 0x181   : > { %v1191_v18 = vpack.c.bf16 %v1182_v17, %v1182_v17  ;;  %v1192_v56 = vpack.c.bf16 %v1186_v21, %v1186_v21 }
 0x182   : > { %1538 = vmatmul.bf16.vlgmr.msra.gmra.mxu3 %v1189_v15  ;;  %1551 = vmatmul.bf16.vlgmr.msrb.gmra.mxu0 %v1190_v16 }
 0x183   : > { %1564 = vmatmul.bf16.vlgmr.msrb.gmra.mxu1 %v1191_v18 }
 0x18e   : > { %1577 = vmatmul.bf16.vlgmr.msrb.gmra.mxu2 %v1192_v56 }
 0x1ff   : > { %v1552_v22 = vpop.f32.mrf.mxu0 }
 0x200   : > { %v1565_v23 = vpop.f32.mrf.mxu1 }
 0x201   : > { %v1526_v24 = vpop.f32.mrf.mxu2 }
 0x202   : > { %v1527_v27 = vadd.f32 %v2393_v25, %v1526_v24 }
 0x205   : > { %v1539_v26 = vpop.f32.mrf.mxu3 }
 0x206   : > { %v1540_v29 = vadd.f32 %v1539_v26, %v1527_v27 }
 0x207   : > { %v1554_v28 = vpop.f32.mrf.mxu0 }
 0x208   : > { %v1567_v30 = vpop.f32.mrf.mxu1  ;;  %v1553_v32 = vadd.f32 %v1552_v22, %v1540_v29 }
 0x209   : > { %v1528_v31 = vpop.f32.mrf.mxu2 }
 0x20a   : > { %v1566_v34 = vadd.f32 %v1565_v23, %v1553_v32 }
 0x20d   : > { %v1541_v33 = vpop.f32.mrf.mxu3 }
 0x211   : > { %v1578_v35 = vpop.f32.mrf.mxu2 }
 0x212   : > { %v1579_v36 = vadd.f32 %v1578_v35, %v1566_v34 }
 0x214   : > { %v1582_v37 = vmax.f32 %v1579_v36, 0.0 }
 0x216   : > { %v1583_v38 = vpack.c.bf16 %v1582_v37, %v1582_v37 }
 0x218   : > { %1584 = vst [vmem:[%s321_s16] sm:$0xf] %v1583_v38 }
 0x219   : > { %v1580_v39 = vpop.f32.mrf.mxu2 }
 0x21a   : > { %2511 = shalt.err (!%p2508_p8)
}
 0x21b   : > { %2331 = dma.vmem_to_hbm [thread:$0]  (%p2639_p5), %s1599_s19, 64, %s1601_s20, %s1586_s21  }
 0x21c PF: > { %p2353_p9 = scmp.ge.s32.totalorder %s2554_s27, 2  ;;  %s1612_s14 = sand.u32 1, %s2542_s24  }
 0x21d   : > { %s1613_s17 = scalar_lea.sflag [#allocation4], %s1612_s14 }
 0x21e   : > { %p2344_p10 = pnand %p2353_p9, %p2643_p6 }
 0x220   : > { %p2345_p11 = pneg %p2344_p10 }
 0x222   : > { %2537 = dma.done.wait (%p2345_p11), %s1613_s17, 64  }
 0x223   : > { %2539 = vsyncadd (%p2345_p11), %s1613_s17, 4294967232  ;;  %p19_p12 = scmp.ge.s32.totalorder %s2626_s30, 4   ;;  %s2797_s24 = smov %s2546_s25 }
 0x224   : > { %s2798_s25 = smov %s2550_s26  ;;  %s2799_s26 = smov %s2637_s10 }
 0x225   : > { %s2800_s27 = smov %s2626_s30  ;;  %21 = sbr.rel (!%p19_p12) target bundleno = 7 (0x7), region = 96 }
 0x22a   :  { %1619 = vsyncpa [#allocation3], 1 }
 0x22b   :  { %1621 = vsyncpa [#allocation3 + $0x1], 1 }
 0x22c   :  { %1622 = vsyncpa [#allocation6], 1 }
 0x22d   :  { %1623 = vsyncpa [#allocation4], 1 }
 0x22e   :  { %1625 = vsyncpa [#allocation4 + $0x1], 1 }

</bundles_post_ra>
